<compile_context>
chip_gen: v7x
topology: tpu7x:2x2x1
jax: 0.10.0
libtpu: 0.0.40
codegen_flags: <defaults>
</compile_context>

<pallas_src>
import jax
import jax.numpy as jnp
from jax import lax
from jax.experimental import pallas as pl
from jax.experimental.pallas import tpu as pltpu

HIDDEN = 9          # nn.RNN(hidden_size=9)
HIDDEN_PAD = 128    # lane-dense padding of the hidden dim
BATCH_TILE = 8      # f32 sublane tile


def rnn_kernel(tok_ref, table_ref, whh_ref, out_ref, pre_scr):
    """Fused embedding-gather + vanilla tanh RNN.

    h_t = tanh(pre_table[token_t] + h_{t-1} @ Whh^T),  h_0 = 0,
    where pre_table already folds  x @ Wih^T + (b_ih + b_hh).

    tok_ref:   (batch, seq)                 int32 SMEM  token ids
    table_ref: (vocab_pad, HIDDEN_PAD)      f32   VMEM  folded pre-activation table
    whh_ref:   (HIDDEN_PAD, HIDDEN_PAD)     f32   VMEM  Whh^T, zero-padded
    out_ref:   (BATCH_TILE, HIDDEN_PAD)     f32   VMEM  final hidden state (padded)
    pre_scr:   (seq*BATCH_TILE, HIDDEN_PAD) f32   VMEM  gathered pre-activations
                                                        (timestep-major rows)
    """
    batch, seq = tok_ref.shape
    bp = out_ref.shape[0]

    # Hygiene: padded batch rows of the scratch are never written; zero them so
    # they hold finite values.  Rows are independent (h_row = tanh(pre_row +
    # h_row @ Whh)), so padded rows never contaminate real ones.
    pre_scr[...] = jnp.zeros_like(pre_scr)

    # In-kernel gather of the folded pre-activations: one row copy per token —
    # no matmul, no (B,S,D) embedding tensor, no wrapper pad/reshape.  All
    # gathers are issued before the recurrence, off the serial critical path.
    for t in range(seq):
        for b in range(batch):
            tok = tok_ref[b, t]
            pre_scr[pl.ds(t * bp + b, 1), :] = table_ref[pl.ds(tok, 1), :]

    whh = whh_ref[...]                       # loop-invariant, held in vregs

    # Recurrence: h carried in vregs, fully unrolled static loop.
    # h_0 = 0  =>  step 0 needs no h@Whh matmul.
    # TODO(synk): prototype holding Whh staged in the MXU
    #   (pltpu.matmul_push_rhs / matmul_acc_lhs / matmul_pop) or a VPU rank-9
    #   update (9 broadcast-FMAs); keep whichever the bundle dump shows
    #   shorter per step — the per-step MXU push/pop is the only serial chain.
    h = jnp.tanh(pre_scr[pl.ds(0, bp), :])
    for t in range(1, seq):
        pre_t = pre_scr[pl.ds(t * bp, bp), :]
        h = jnp.tanh(pre_t + jnp.dot(h, whh, preferred_element_type=jnp.float32))
    out_ref[...] = h
    # TODO(synk): for larger seq switch the recurrence to
    #   lax.fori_loop(..., unroll=True) over pl.ds/pl.multiple_of tiles of
    #   pre_scr to bound vreg live ranges; for larger batch add a batch-block
    #   grid axis with dimension_semantics=("parallel",) (v7x: 2 TensorCores).


def precompute_kernel_params(embedding, w_ih, w_hh, b_ih, b_hh):
    """Call-invariant padded kernel weights, computed once at init and cached."""
    vocab = embedding.shape[0]
    vocab_pad = pl.cdiv(vocab, BATCH_TILE) * BATCH_TILE
    # pre_table[v] = embedding[v] @ Wih^T + (b_ih + b_hh); padding_idx=0 means
    # row 0 of the embedding is zero, so table row 0 is just the bias — exactly
    # what the reference computes for token 0.
    pre = embedding.astype(jnp.float32) @ w_ih.T + (b_ih + b_hh)       # (vocab, 9)
    pre_table = jnp.zeros((vocab_pad, HIDDEN_PAD), jnp.float32)
    pre_table = pre_table.at[:vocab, :HIDDEN].set(pre)
    # Whh stored transposed so the recurrence is `h @ W`; zero padding keeps the
    # padded hidden lanes at tanh(0) = 0 forever, so the final slice is exact.
    whh_p = jnp.zeros((HIDDEN_PAD, HIDDEN_PAD), jnp.float32)
    whh_p = whh_p.at[:HIDDEN, :HIDDEN].set(w_hh.T)
    return {"pre_table": pre_table, "whh_p": whh_p}


def init_params(key, vocab_size, vector_dim):
    k_emb, k_wih, k_whh, k_bih, k_bhh = jax.random.split(key, 5)
    bound = 1.0 / jnp.sqrt(HIDDEN)
    emb = jax.random.normal(k_emb, (vocab_size, vector_dim), jnp.float32)
    emb = emb.at[0].set(0.0)                                           # padding_idx=0
    params = {
        "embedding": emb,
        "w_ih": jax.random.uniform(k_wih, (HIDDEN, vector_dim), jnp.float32, -bound, bound),
        "w_hh": jax.random.uniform(k_whh, (HIDDEN, HIDDEN), jnp.float32, -bound, bound),
        "b_ih": jax.random.uniform(k_bih, (HIDDEN,), jnp.float32, -bound, bound),
        "b_hh": jax.random.uniform(k_bhh, (HIDDEN,), jnp.float32, -bound, bound),
    }
    params.update(precompute_kernel_params(params["embedding"], params["w_ih"],
                                           params["w_hh"], params["b_ih"],
                                           params["b_hh"]))
    return params


@jax.jit
def nlp_division_forward(token_ids, params):
    """Full forward (inference path, y=None): returns (batch, 9)."""
    batch, seq = token_ids.shape
    assert batch <= BATCH_TILE, "single-tile kernel; see TODO(synk) for larger batch"

    vmem = pl.BlockSpec(memory_space=pltpu.MemorySpace.VMEM)
    smem = pl.BlockSpec(memory_space=pltpu.MemorySpace.SMEM)
    out_pad = pl.pallas_call(
        rnn_kernel,
        out_shape=jax.ShapeDtypeStruct((BATCH_TILE, HIDDEN_PAD), jnp.float32),
        in_specs=[smem, vmem, vmem],
        out_specs=vmem,
        scratch_shapes=[pltpu.VMEM((seq * BATCH_TILE, HIDDEN_PAD), jnp.float32)],
    )(token_ids.astype(jnp.int32), params["pre_table"], params["whh_p"])
    return out_pad[:batch, :HIDDEN]


def _reference_forward(token_ids, params):
    """Pure-JAX reference mirroring the PyTorch inference path."""
    x_emb = jnp.take(params["embedding"], token_ids, axis=0)          # (B, S, D)

    def step(h, x_t):
        h_new = jnp.tanh(x_t @ params["w_ih"].T + h @ params["w_hh"].T
                         + params["b_ih"] + params["b_hh"])
        return h_new, None

    h0 = jnp.zeros((x_emb.shape[0], HIDDEN), jnp.float32)
    h_final, _ = lax.scan(step, h0, jnp.transpose(x_emb, (1, 0, 2)))
    return h_final


if __name__ == "__main__":
    # Small shapes consistent with the module: batch=2, sentence_length=8,
    # vector_dim=32, vocab size 30.
    batch, sentence_length, vector_dim, vocab_size = 2, 8, 32, 30

    key = jax.random.PRNGKey(0)
    k_params, k_tokens = jax.random.split(key)
    params = init_params(k_params, vocab_size, vector_dim)
    token_ids = jax.random.randint(k_tokens, (batch, sentence_length), 0, vocab_size)

    y_pred = jax.block_until_ready(nlp_division_forward(token_ids, params))
    assert y_pred.shape == (batch, HIDDEN), y_pred.shape

    y_ref = jax.block_until_ready(_reference_forward(token_ids, params))
    assert jnp.allclose(y_pred, y_ref, rtol=1e-3, atol=1e-3), (
        f"mismatch: max abs err {jnp.max(jnp.abs(y_pred - y_ref))}")

    # TODO(synk): the y!=None CrossEntropyLoss training path is not implemented
    # (inference path only), and nn.AvgPool1d is defined but unused in forward.

    print("KERNEL_OK")
</pallas_src>

<mosaic_0001>
module attributes {stable_mosaic.version = 11 : i64} {
  func.func @rnn_kernel(%arg0: memref<2x8xi32, #tpu.memory_space<smem>>, %arg1: memref<32x128xf32, #tpu.memory_space<vmem>>, %arg2: memref<128x128xf32, #tpu.memory_space<vmem>>, %arg3: memref<8x128xf32, #tpu.memory_space<vmem>>, %arg4: memref<64x128xf32, #tpu.memory_space<vmem>>) attributes {dimension_semantics = [], scalar_prefetch = 0 : i64, scratch_operands = 1 : i64, tpu.core_type = #tpu.core_type<tc>} {
    %cst = arith.constant 0.000000e+00 : f32
    %0 = vector.broadcast %cst : f32 to vector<64x128xf32>
    %c0 = arith.constant 0 : index
    %c0_0 = arith.constant 0 : index
    %1 = vector.load %arg4[%c0, %c0_0] : memref<64x128xf32, #tpu.memory_space<vmem>>, vector<64x128xf32>
    tpu.vector_store %arg4[%c0, %c0_0], %0 {strides = array<i32>} : memref<64x128xf32, #tpu.memory_space<vmem>>, vector<64x128xf32>,
    %c0_1 = arith.constant 0 : index
    %c0_2 = arith.constant 0 : index
    %2 = memref.load %arg0[%c0_1, %c0_2] : memref<2x8xi32, #tpu.memory_space<smem>>
    %3 = arith.index_cast %2 : i32 to index
    %c0_3 = arith.constant 0 : index
    %4 = vector.load %arg1[%3, %c0_3] : memref<32x128xf32, #tpu.memory_space<vmem>>, vector<1x128xf32>
    %c0_4 = arith.constant 0 : index
    %c0_5 = arith.constant 0 : index
    %5 = vector.load %arg4[%c0_4, %c0_5] : memref<64x128xf32, #tpu.memory_space<vmem>>, vector<1x128xf32>
    tpu.vector_store %arg4[%c0_4, %c0_5], %4 {strides = array<i32>} : memref<64x128xf32, #tpu.memory_space<vmem>>, vector<1x128xf32>,
    %c1 = arith.constant 1 : index
    %c0_6 = arith.constant 0 : index
    %6 = memref.load %arg0[%c1, %c0_6] : memref<2x8xi32, #tpu.memory_space<smem>>
    %7 = arith.index_cast %6 : i32 to index
    %c0_7 = arith.constant 0 : index
    %8 = vector.load %arg1[%7, %c0_7] : memref<32x128xf32, #tpu.memory_space<vmem>>, vector<1x128xf32>
    %c1_8 = arith.constant 1 : index
    %c0_9 = arith.constant 0 : index
    %9 = vector.load %arg4[%c1_8, %c0_9] : memref<64x128xf32, #tpu.memory_space<vmem>>, vector<1x128xf32>
    tpu.vector_store %arg4[%c1_8, %c0_9], %8 {strides = array<i32>} : memref<64x128xf32, #tpu.memory_space<vmem>>, vector<1x128xf32>,
    %c0_10 = arith.constant 0 : index
    %c1_11 = arith.constant 1 : index
    %10 = memref.load %arg0[%c0_10, %c1_11] : memref<2x8xi32, #tpu.memory_space<smem>>
    %11 = arith.index_cast %10 : i32 to index
    %c0_12 = arith.constant 0 : index
    %12 = vector.load %arg1[%11, %c0_12] : memref<32x128xf32, #tpu.memory_space<vmem>>, vector<1x128xf32>
    %c8 = arith.constant 8 : index
    %c0_13 = arith.constant 0 : index
    %13 = vector.load %arg4[%c8, %c0_13] : memref<64x128xf32, #tpu.memory_space<vmem>>, vector<1x128xf32>
    tpu.vector_store %arg4[%c8, %c0_13], %12 {strides = array<i32>} : memref<64x128xf32, #tpu.memory_space<vmem>>, vector<1x128xf32>,
    %c1_14 = arith.constant 1 : index
    %c1_15 = arith.constant 1 : index
    %14 = memref.load %arg0[%c1_14, %c1_15] : memref<2x8xi32, #tpu.memory_space<smem>>
    %15 = arith.index_cast %14 : i32 to index
    %c0_16 = arith.constant 0 : index
    %16 = vector.load %arg1[%15, %c0_16] : memref<32x128xf32, #tpu.memory_space<vmem>>, vector<1x128xf32>
    %c9 = arith.constant 9 : index
    %c0_17 = arith.constant 0 : index
    %17 = vector.load %arg4[%c9, %c0_17] : memref<64x128xf32, #tpu.memory_space<vmem>>, vector<1x128xf32>
    tpu.vector_store %arg4[%c9, %c0_17], %16 {strides = array<i32>} : memref<64x128xf32, #tpu.memory_space<vmem>>, vector<1x128xf32>,
    %c0_18 = arith.constant 0 : index
    %c2 = arith.constant 2 : index
    %18 = memref.load %arg0[%c0_18, %c2] : memref<2x8xi32, #tpu.memory_space<smem>>
    %19 = arith.index_cast %18 : i32 to index
    %c0_19 = arith.constant 0 : index
    %20 = vector.load %arg1[%19, %c0_19] : memref<32x128xf32, #tpu.memory_space<vmem>>, vector<1x128xf32>
    %c16 = arith.constant 16 : index
    %c0_20 = arith.constant 0 : index
    %21 = vector.load %arg4[%c16, %c0_20] : memref<64x128xf32, #tpu.memory_space<vmem>>, vector<1x128xf32>
    tpu.vector_store %arg4[%c16, %c0_20], %20 {strides = array<i32>} : memref<64x128xf32, #tpu.memory_space<vmem>>, vector<1x128xf32>,
    %c1_21 = arith.constant 1 : index
    %c2_22 = arith.constant 2 : index
    %22 = memref.load %arg0[%c1_21, %c2_22] : memref<2x8xi32, #tpu.memory_space<smem>>
    %23 = arith.index_cast %22 : i32 to index
    %c0_23 = arith.constant 0 : index
    %24 = vector.load %arg1[%23, %c0_23] : memref<32x128xf32, #tpu.memory_space<vmem>>, vector<1x128xf32>
    %c17 = arith.constant 17 : index
    %c0_24 = arith.constant 0 : index
    %25 = vector.load %arg4[%c17, %c0_24] : memref<64x128xf32, #tpu.memory_space<vmem>>, vector<1x128xf32>
    tpu.vector_store %arg4[%c17, %c0_24], %24 {strides = array<i32>} : memref<64x128xf32, #tpu.memory_space<vmem>>, vector<1x128xf32>,
    %c0_25 = arith.constant 0 : index
    %c3 = arith.constant 3 : index
    %26 = memref.load %arg0[%c0_25, %c3] : memref<2x8xi32, #tpu.memory_space<smem>>
    %27 = arith.index_cast %26 : i32 to index
    %c0_26 = arith.constant 0 : index
    %28 = vector.load %arg1[%27, %c0_26] : memref<32x128xf32, #tpu.memory_space<vmem>>, vector<1x128xf32>
    %c24 = arith.constant 24 : index
    %c0_27 = arith.constant 0 : index
    %29 = vector.load %arg4[%c24, %c0_27] : memref<64x128xf32, #tpu.memory_space<vmem>>, vector<1x128xf32>
    tpu.vector_store %arg4[%c24, %c0_27], %28 {strides = array<i32>} : memref<64x128xf32, #tpu.memory_space<vmem>>, vector<1x128xf32>,
    %c1_28 = arith.constant 1 : index
    %c3_29 = arith.constant 3 : index
    %30 = memref.load %arg0[%c1_28, %c3_29] : memref<2x8xi32, #tpu.memory_space<smem>>
    %31 = arith.index_cast %30 : i32 to index
    %c0_30 = arith.constant 0 : index
    %32 = vector.load %arg1[%31, %c0_30] : memref<32x128xf32, #tpu.memory_space<vmem>>, vector<1x128xf32>
    %c25 = arith.constant 25 : index
    %c0_31 = arith.constant 0 : index
    %33 = vector.load %arg4[%c25, %c0_31] : memref<64x128xf32, #tpu.memory_space<vmem>>, vector<1x128xf32>
    tpu.vector_store %arg4[%c25, %c0_31], %32 {strides = array<i32>} : memref<64x128xf32, #tpu.memory_space<vmem>>, vector<1x128xf32>,
    %c0_32 = arith.constant 0 : index
    %c4 = arith.constant 4 : index
    %34 = memref.load %arg0[%c0_32, %c4] : memref<2x8xi32, #tpu.memory_space<smem>>
    %35 = arith.index_cast %34 : i32 to index
    %c0_33 = arith.constant 0 : index
    %36 = vector.load %arg1[%35, %c0_33] : memref<32x128xf32, #tpu.memory_space<vmem>>, vector<1x128xf32>
    %c32 = arith.constant 32 : index
    %c0_34 = arith.constant 0 : index
    %37 = vector.load %arg4[%c32, %c0_34] : memref<64x128xf32, #tpu.memory_space<vmem>>, vector<1x128xf32>
    tpu.vector_store %arg4[%c32, %c0_34], %36 {strides = array<i32>} : memref<64x128xf32, #tpu.memory_space<vmem>>, vector<1x128xf32>,
    %c1_35 = arith.constant 1 : index
    %c4_36 = arith.constant 4 : index
    %38 = memref.load %arg0[%c1_35, %c4_36] : memref<2x8xi32, #tpu.memory_space<smem>>
    %39 = arith.index_cast %38 : i32 to index
    %c0_37 = arith.constant 0 : index
    %40 = vector.load %arg1[%39, %c0_37] : memref<32x128xf32, #tpu.memory_space<vmem>>, vector<1x128xf32>
    %c33 = arith.constant 33 : index
    %c0_38 = arith.constant 0 : index
    %41 = vector.load %arg4[%c33, %c0_38] : memref<64x128xf32, #tpu.memory_space<vmem>>, vector<1x128xf32>
    tpu.vector_store %arg4[%c33, %c0_38], %40 {strides = array<i32>} : memref<64x128xf32, #tpu.memory_space<vmem>>, vector<1x128xf32>,
    %c0_39 = arith.constant 0 : index
    %c5 = arith.constant 5 : index
    %42 = memref.load %arg0[%c0_39, %c5] : memref<2x8xi32, #tpu.memory_space<smem>>
    %43 = arith.index_cast %42 : i32 to index
    %c0_40 = arith.constant 0 : index
    %44 = vector.load %arg1[%43, %c0_40] : memref<32x128xf32, #tpu.memory_space<vmem>>, vector<1x128xf32>
    %c40 = arith.constant 40 : index
    %c0_41 = arith.constant 0 : index
    %45 = vector.load %arg4[%c40, %c0_41] : memref<64x128xf32, #tpu.memory_space<vmem>>, vector<1x128xf32>
    tpu.vector_store %arg4[%c40, %c0_41], %44 {strides = array<i32>} : memref<64x128xf32, #tpu.memory_space<vmem>>, vector<1x128xf32>,
    %c1_42 = arith.constant 1 : index
    %c5_43 = arith.constant 5 : index
    %46 = memref.load %arg0[%c1_42, %c5_43] : memref<2x8xi32, #tpu.memory_space<smem>>
    %47 = arith.index_cast %46 : i32 to index
    %c0_44 = arith.constant 0 : index
    %48 = vector.load %arg1[%47, %c0_44] : memref<32x128xf32, #tpu.memory_space<vmem>>, vector<1x128xf32>
    %c41 = arith.constant 41 : index
    %c0_45 = arith.constant 0 : index
    %49 = vector.load %arg4[%c41, %c0_45] : memref<64x128xf32, #tpu.memory_space<vmem>>, vector<1x128xf32>
    tpu.vector_store %arg4[%c41, %c0_45], %48 {strides = array<i32>} : memref<64x128xf32, #tpu.memory_space<vmem>>, vector<1x128xf32>,
    %c0_46 = arith.constant 0 : index
    %c6 = arith.constant 6 : index
    %50 = memref.load %arg0[%c0_46, %c6] : memref<2x8xi32, #tpu.memory_space<smem>>
    %51 = arith.index_cast %50 : i32 to index
    %c0_47 = arith.constant 0 : index
    %52 = vector.load %arg1[%51, %c0_47] : memref<32x128xf32, #tpu.memory_space<vmem>>, vector<1x128xf32>
    %c48 = arith.constant 48 : index
    %c0_48 = arith.constant 0 : index
    %53 = vector.load %arg4[%c48, %c0_48] : memref<64x128xf32, #tpu.memory_space<vmem>>, vector<1x128xf32>
    tpu.vector_store %arg4[%c48, %c0_48], %52 {strides = array<i32>} : memref<64x128xf32, #tpu.memory_space<vmem>>, vector<1x128xf32>,
    %c1_49 = arith.constant 1 : index
    %c6_50 = arith.constant 6 : index
    %54 = memref.load %arg0[%c1_49, %c6_50] : memref<2x8xi32, #tpu.memory_space<smem>>
    %55 = arith.index_cast %54 : i32 to index
    %c0_51 = arith.constant 0 : index
    %56 = vector.load %arg1[%55, %c0_51] : memref<32x128xf32, #tpu.memory_space<vmem>>, vector<1x128xf32>
    %c49 = arith.constant 49 : index
    %c0_52 = arith.constant 0 : index
    %57 = vector.load %arg4[%c49, %c0_52] : memref<64x128xf32, #tpu.memory_space<vmem>>, vector<1x128xf32>
    tpu.vector_store %arg4[%c49, %c0_52], %56 {strides = array<i32>} : memref<64x128xf32, #tpu.memory_space<vmem>>, vector<1x128xf32>,
    %c0_53 = arith.constant 0 : index
    %c7 = arith.constant 7 : index
    %58 = memref.load %arg0[%c0_53, %c7] : memref<2x8xi32, #tpu.memory_space<smem>>
    %59 = arith.index_cast %58 : i32 to index
    %c0_54 = arith.constant 0 : index
    %60 = vector.load %arg1[%59, %c0_54] : memref<32x128xf32, #tpu.memory_space<vmem>>, vector<1x128xf32>
    %c56 = arith.constant 56 : index
    %c0_55 = arith.constant 0 : index
    %61 = vector.load %arg4[%c56, %c0_55] : memref<64x128xf32, #tpu.memory_space<vmem>>, vector<1x128xf32>
    tpu.vector_store %arg4[%c56, %c0_55], %60 {strides = array<i32>} : memref<64x128xf32, #tpu.memory_space<vmem>>, vector<1x128xf32>,
    %c1_56 = arith.constant 1 : index
    %c7_57 = arith.constant 7 : index
    %62 = memref.load %arg0[%c1_56, %c7_57] : memref<2x8xi32, #tpu.memory_space<smem>>
    %63 = arith.index_cast %62 : i32 to index
    %c0_58 = arith.constant 0 : index
    %64 = vector.load %arg1[%63, %c0_58] : memref<32x128xf32, #tpu.memory_space<vmem>>, vector<1x128xf32>
    %c57 = arith.constant 57 : index
    %c0_59 = arith.constant 0 : index
    %65 = vector.load %arg4[%c57, %c0_59] : memref<64x128xf32, #tpu.memory_space<vmem>>, vector<1x128xf32>
    tpu.vector_store %arg4[%c57, %c0_59], %64 {strides = array<i32>} : memref<64x128xf32, #tpu.memory_space<vmem>>, vector<1x128xf32>,
    %c0_60 = arith.constant 0 : index
    %c0_61 = arith.constant 0 : index
    %66 = vector.load %arg2[%c0_60, %c0_61] : memref<128x128xf32, #tpu.memory_space<vmem>>, vector<128x128xf32>
    %c0_62 = arith.constant 0 : index
    %c0_63 = arith.constant 0 : index
    %67 = vector.load %arg4[%c0_62, %c0_63] : memref<64x128xf32, #tpu.memory_space<vmem>>, vector<8x128xf32>
    %68 = math.tanh %67 : vector<8x128xf32>
    %c8_64 = arith.constant 8 : index
    %c0_65 = arith.constant 0 : index
    %69 = vector.load %arg4[%c8_64, %c0_65] : memref<64x128xf32, #tpu.memory_space<vmem>>, vector<8x128xf32>
    %cst_66 = arith.constant dense<0.000000e+00> : vector<8x128xf32>
    %70 = tpu.matmul %68, %66, %cst_66 {dimension_numbers = #tpu.dot_dimension_numbers<[1], [0], [0], [1], [0, 0, 1, 1], [], []>} : vector<8x128xf32>, vector<128x128xf32>, vector<8x128xf32> -> vector<8x128xf32>
    %71 = arith.addf %69, %70 : vector<8x128xf32>
    %72 = math.tanh %71 : vector<8x128xf32>
    %c16_67 = arith.constant 16 : index
    %c0_68 = arith.constant 0 : index
    %73 = vector.load %arg4[%c16_67, %c0_68] : memref<64x128xf32, #tpu.memory_space<vmem>>, vector<8x128xf32>
    %cst_69 = arith.constant dense<0.000000e+00> : vector<8x128xf32>
    %74 = tpu.matmul %72, %66, %cst_69 {dimension_numbers = #tpu.dot_dimension_numbers<[1], [0], [0], [1], [0, 0, 1, 1], [], []>} : vector<8x128xf32>, vector<128x128xf32>, vector<8x128xf32> -> vector<8x128xf32>
    %75 = arith.addf %73, %74 : vector<8x128xf32>
    %76 = math.tanh %75 : vector<8x128xf32>
    %c24_70 = arith.constant 24 : index
    %c0_71 = arith.constant 0 : index
    %77 = vector.load %arg4[%c24_70, %c0_71] : memref<64x128xf32, #tpu.memory_space<vmem>>, vector<8x128xf32>
    %cst_72 = arith.constant dense<0.000000e+00> : vector<8x128xf32>
    %78 = tpu.matmul %76, %66, %cst_72 {dimension_numbers = #tpu.dot_dimension_numbers<[1], [0], [0], [1], [0, 0, 1, 1], [], []>} : vector<8x128xf32>, vector<128x128xf32>, vector<8x128xf32> -> vector<8x128xf32>
    %79 = arith.addf %77, %78 : vector<8x128xf32>
    %80 = math.tanh %79 : vector<8x128xf32>
    %c32_73 = arith.constant 32 : index
    %c0_74 = arith.constant 0 : index
    %81 = vector.load %arg4[%c32_73, %c0_74] : memref<64x128xf32, #tpu.memory_space<vmem>>, vector<8x128xf32>
    %cst_75 = arith.constant dense<0.000000e+00> : vector<8x128xf32>
    %82 = tpu.matmul %80, %66, %cst_75 {dimension_numbers = #tpu.dot_dimension_numbers<[1], [0], [0], [1], [0, 0, 1, 1], [], []>} : vector<8x128xf32>, vector<128x128xf32>, vector<8x128xf32> -> vector<8x128xf32>
    %83 = arith.addf %81, %82 : vector<8x128xf32>
    %84 = math.tanh %83 : vector<8x128xf32>
    %c40_76 = arith.constant 40 : index
    %c0_77 = arith.constant 0 : index
    %85 = vector.load %arg4[%c40_76, %c0_77] : memref<64x128xf32, #tpu.memory_space<vmem>>, vector<8x128xf32>
    %cst_78 = arith.constant dense<0.000000e+00> : vector<8x128xf32>
    %86 = tpu.matmul %84, %66, %cst_78 {dimension_numbers = #tpu.dot_dimension_numbers<[1], [0], [0], [1], [0, 0, 1, 1], [], []>} : vector<8x128xf32>, vector<128x128xf32>, vector<8x128xf32> -> vector<8x128xf32>
    %87 = arith.addf %85, %86 : vector<8x128xf32>
    %88 = math.tanh %87 : vector<8x128xf32>
    %c48_79 = arith.constant 48 : index
    %c0_80 = arith.constant 0 : index
    %89 = vector.load %arg4[%c48_79, %c0_80] : memref<64x128xf32, #tpu.memory_space<vmem>>, vector<8x128xf32>
    %cst_81 = arith.constant dense<0.000000e+00> : vector<8x128xf32>
    %90 = tpu.matmul %88, %66, %cst_81 {dimension_numbers = #tpu.dot_dimension_numbers<[1], [0], [0], [1], [0, 0, 1, 1], [], []>} : vector<8x128xf32>, vector<128x128xf32>, vector<8x128xf32> -> vector<8x128xf32>
    %91 = arith.addf %89, %90 : vector<8x128xf32>
    %92 = math.tanh %91 : vector<8x128xf32>
    %c56_82 = arith.constant 56 : index
    %c0_83 = arith.constant 0 : index
    %93 = vector.load %arg4[%c56_82, %c0_83] : memref<64x128xf32, #tpu.memory_space<vmem>>, vector<8x128xf32>
    %cst_84 = arith.constant dense<0.000000e+00> : vector<8x128xf32>
    %94 = tpu.matmul %92, %66, %cst_84 {dimension_numbers = #tpu.dot_dimension_numbers<[1], [0], [0], [1], [0, 0, 1, 1], [], []>} : vector<8x128xf32>, vector<128x128xf32>, vector<8x128xf32> -> vector<8x128xf32>
    %95 = arith.addf %93, %94 : vector<8x128xf32>
    %96 = math.tanh %95 : vector<8x128xf32>
    %c0_85 = arith.constant 0 : index
    %c0_86 = arith.constant 0 : index
    %97 = vector.load %arg3[%c0_85, %c0_86] : memref<8x128xf32, #tpu.memory_space<vmem>>, vector<8x128xf32>
    tpu.vector_store %arg3[%c0_85, %c0_86], %96 {strides = array<i32>} : memref<8x128xf32, #tpu.memory_space<vmem>>, vector<8x128xf32>,
    return
  }
}

</mosaic_0001>

<bundles_post_ra>
// kernel: nlp_division_forward.1
= control target key start
LH: loop header
LB: loop body
LE: loop exit
PB: predicated region body
PF: predicated region fallthrough
CT: control target
= control target key end

     0   :  { %8 = vsyncpa [#allocation5], 0  ;;  %s1526_s0 = inlined_call_operand.hbm [shape: s32[2,8], index: 0, kind: input, shape index: {}]   ;;  %s1527_s1 = inlined_call_operand.hbm [shape: f32[32,128], index: 1, kind: input, shape index: {}]   ;;  %s1528_s2 = inlined_call_operand.hbm [shape: f32[128,128], index: 2, kind: input, shape index: {}]   ;;  %s1529_s3 = inlined_call_operand.vmem [shape: f32[8,128], index: 3, kind: output, shape index: {}]  }
   0x1   :  { %9 = vsyncpa [#allocation4], 0 }
   0x2   :  { %10 = vsyncpa [#allocation8], 0  ;;  %s1249_s14 = scalar_lea.hbm %s1526_s0, 32 }
   0x3   :  { %p1250_p0 = scmp.ne.s32.totalorder %s1526_s0, %s1249_s14  ;;  %p1253_p1 = scmp.lt.u32.totalorder %s1249_s14, %s1526_s0 }
   0x5   :  { %p1255_p2 = pnand %p1253_p1, %p1250_p0 }
   0x7   :  { %1258 = shalt.err (!%p1255_p2)
}
   0x8   :  { %s1309_s19 = smov [#allocation3]   ;;  %s1310_s22 = smov [#allocation6]  }
   0x9   :  { %18 = dma.hbm_to_smem %s1526_s0, 32, %s1309_s19, [#allocation5]  }
   0xa   :  { %s24_s23 = sshll.u32 %s1310_s22, 4  ;;  %s1259_s26 = scalar_lea.hbm %s1527_s1, 512  ;;  %s25_s23 = int_to_ptr.vmem [resolvable:$true] %s24_s23 }
   0xb   :  { %p1260_p3 = scmp.ne.s32.totalorder %s1527_s1, %s1259_s26  ;;  %p1263_p4 = scmp.lt.u32.totalorder %s1259_s26, %s1527_s1 }
   0xd   :  { %p1265_p5 = pnand %p1263_p4, %p1260_p3 }
   0xf   :  { %1268 = shalt.err (!%p1265_p5)
}
  0x10   :  { %s1269_s4 = scalar_lea.vmem %s25_s23, 512  ;;  %p1274_p7 = scmp.lt.s32.totalorder %s25_s23, %s25_s23 }
  0x11   :  { %p1270_p6 = scmp.ne.s32.totalorder %s25_s23, %s1269_s4  ;;  %p1275_p8 = scmp.lt.s32.totalorder %s1269_s4, %s1269_s4 }
  0x13   :  { %p1276_p9 = por %p1275_p8, %p1274_p7 }
  0x15   :  { %p1277_p10 = pnand %p1276_p9, %p1270_p6 }
  0x17   :  { %1280 = shalt.err (!%p1277_p10)
}
  0x18   :  { %s1311_s0 = smov 128   ;;  %s1312_s5 = smov 8  }
  0x19   :  { %30 = dma.hbm_to_vmem [thread:$0]  %s1527_s1, 512, %s25_s23, [#allocation4], %s1311_s0, %s1311_s0, %s1312_s5  }
  0x1a   :  { %s1313_s8 = smov [#allocation7]   ;;  %s1281_s12 = scalar_lea.hbm %s1528_s2, 2048 }
  0x1b   :  { %s36_s9 = sshll.u32 %s1313_s8, 4  ;;  %p1282_p11 = scmp.ne.s32.totalorder %s1528_s2, %s1281_s12  ;;  %s37_s9 = int_to_ptr.vmem [resolvable:$true] %s36_s9 }
  0x1c   :  { %p1285_p12 = scmp.lt.u32.totalorder %s1281_s12, %s1528_s2 }
  0x1e   :  { %p1287_p13 = pnand %p1285_p12, %p1282_p11 }
  0x20   :  { %1290 = shalt.err (!%p1287_p13)
}
  0x21   :  { %s1291_s17 = scalar_lea.vmem %s37_s9, 2048  ;;  %p1296_p1 = scmp.lt.s32.totalorder %s37_s9, %s37_s9 }
  0x22   :  { %p1292_p0 = scmp.ne.s32.totalorder %s37_s9, %s1291_s17  ;;  %p1297_p2 = scmp.lt.s32.totalorder %s1291_s17, %s1291_s17 }
  0x24   :  { %p1298_p3 = por %p1297_p2, %p1296_p1 }
  0x26   :  { %p1299_p4 = pnand %p1298_p3, %p1292_p0 }
  0x28   :  { %1302 = shalt.err (!%p1299_p4)
}
  0x29   :  { %42 = dma.hbm_to_vmem [thread:$0]  %s1528_s2, 2048, %s37_s9, [#allocation8], %s1311_s0, %s1311_s0, %s1312_s5  }
  0x2a   :  { %1303 = dma.done.wait [#allocation5], 32  }
  0x2b   :  { %1304 = vsyncadd [#allocation5], 4294967264 }
  0x2c   :  { %1305 = dma.done.wait [#allocation4], 512  }
  0x2d   :  { %1306 = vsyncadd [#allocation4], 4294966784 }
  0x2e   :  { %1307 = dma.done.wait [#allocation8], 2048  }
  0x2f   :  { %1308 = vsyncadd [#allocation8], 4294965248 }
  0x30   :  { %52 = sfence }
  0x31   :  { %v125_v0 = vld [vmem:[#allocation7] sm:$0xff]  ;;  %v126_v1 = vld [vmem:[#allocation7 + $0x8] sm:$0xff]  ;;  %v127_v2 = vld [vmem:[#allocation7 + $0x10] sm:$0xff]  ;;  %v1314_v3 = vmov 0.0|0.0   ;;  %vm1315_vm0 = vmmov 0   ;;  %v1316_v6 = vmov 0.0  }
  0x32   :  { %1057 = vmatprep.subr.bf16.mxu0 %v1314_v3  ;;  %v1374_v4 = vpack.c.bf16 %v126_v1, %v125_v0  ;;  %v128_v5 = vld [vmem:[#allocation7 + $0x18] sm:$0xff]  ;;  %844 = vmatprep.mubr.msk.f32.mxu0 %vm1315_vm0, %v1316_v6  ;;  %53 = vst [vmem:[#allocation2] sm:$0xff] %v1316_v6  ;;  %54 = vst [vmem:[#allocation2 + $0x8] sm:$0xff] %v1316_v6  ;;  %s61_s2 = sld [smem:[#allocation3]]  ;;  %s679_s20 = sld [smem:[#allocation3 + $0x1]]  ;;  %v129_v8 = vld [vmem:[#allocation7 + $0x20] sm:$0xff] }
  0x33   :  { %55 = vst [vmem:[#allocation2 + $0x10] sm:$0xff] %v1316_v6  ;;  %56 = vst [vmem:[#allocation2 + $0x18] sm:$0xff] %v1316_v6  ;;  %s678_s19 = sld [smem:[#allocation3 + $0x80]]  ;;  %1081 = vmatprep.subr.bf16.mxu1 %v1314_v3  ;;  %879 = vmatprep.mubr.msk.f32.mxu1 %vm1315_vm0, %v1316_v6  ;;  %v1390_v7 = vpack.c.bf16 %v128_v5, %v127_v2  ;;  %v130_v9 = vld [vmem:[#allocation7 + $0x28] sm:$0xff]  ;;  %s680_s21 = sld [smem:[#allocation3 + $0x81]]  ;;  %v131_v11 = vld [vmem:[#allocation7 + $0x30] sm:$0xff] }
  0x34   :  { %57 = vst [vmem:[#allocation2 + $0x20] sm:$0xff] %v1316_v6  ;;  %58 = vst [vmem:[#allocation2 + $0x28] sm:$0xff] %v1316_v6  ;;  %1059 = vmatpush3.bf16.msra.mxu0 %v1374_v4  ;;  %1083 = vmatpush3.bf16.msra.mxu1 %v1374_v4  ;;  %v1396_v10 = vpack.c.bf16 %v130_v9, %v129_v8  ;;  %v132_v12 = vld [vmem:[#allocation7 + $0x38] sm:$0xff]  ;;  %v133_v18 = vld [vmem:[#allocation7 + $0x40] sm:$0xff]  ;;  %s681_s26 = sld [smem:[#allocation3 + $0x2]]  ;;  %s683_s30 = sld [smem:[#allocation3 + $0x3]] }
  0x35   :  { %59 = vst [vmem:[#allocation2 + $0x30] sm:$0xff] %v1316_v6  ;;  %60 = vst [vmem:[#allocation2 + $0x38] sm:$0xff] %v1316_v6  ;;  %1060 = vmatprep.subr.bf16.mxu0 %v1314_v3  ;;  %1084 = vmatprep.subr.bf16.mxu1 %v1314_v3  ;;  %v1402_v16 = vpack.c.bf16 %v132_v12, %v131_v11  ;;  %v134_v19 = vld [vmem:[#allocation7 + $0x48] sm:$0xff]  ;;  %v135_v21 = vld [vmem:[#allocation7 + $0x50] sm:$0xff]  ;;  %s682_s27 = sld [smem:[#allocation3 + $0x82]]  ;;  %s684_s4 = sld [smem:[#allocation3 + $0x83]] }
  0x36   :  { %v1408_v20 = vpack.c.bf16 %v134_v19, %v133_v18  ;;  %v136_v22 = vld [vmem:[#allocation7 + $0x58] sm:$0xff]  ;;  %v137_v25 = vld [vmem:[#allocation7 + $0x60] sm:$0xff]  ;;  %v138_v26 = vld [vmem:[#allocation7 + $0x68] sm:$0xff]  ;;  %s685_s6 = sld [smem:[#allocation3 + $0x4]]  ;;  %s687_s10 = sld [smem:[#allocation3 + $0x5]] }
  0x37   :  { %v1414_v24 = vpack.c.bf16 %v136_v22, %v135_v21  ;;  %v1420_v27 = vpack.c.bf16 %v138_v26, %v137_v25  ;;  %v139_v28 = vld [vmem:[#allocation7 + $0x70] sm:$0xff]  ;;  %v140_v29 = vld [vmem:[#allocation7 + $0x78] sm:$0xff]  ;;  %s686_s7 = sld [smem:[#allocation3 + $0x84]]  ;;  %s688_s11 = sld [smem:[#allocation3 + $0x85]] }
  0x38   :  { %1062 = vmatpush3.bf16.msra.mxu0 %v1390_v7  ;;  %1086 = vmatpush3.bf16.msra.mxu1 %v1390_v7  ;;  %s62_s22 = scalar_lea.vmem [#allocation6], %s61_s2  ;;  %s70_s24 = scalar_lea.vmem [#allocation6], %s679_s20  ;;  %v1426_v30 = vpack.c.bf16 %v140_v29, %v139_v28 }
  0x39   :  { %1063 = vmatprep.subr.bf16.mxu0 %v1314_v3  ;;  %v63_v13 = vld [vmem:[%s62_s22] sm:$0x1]  ;;  %1087 = vmatprep.subr.bf16.mxu1 %v1314_v3  ;;  %s66_s23 = scalar_lea.vmem [#allocation6], %s678_s19  ;;  %s74_s25 = scalar_lea.vmem [#allocation6], %s680_s21 }
  0x3a   :  { %64 = vst [vmem:[#allocation2] sm:$0x1] %v63_v13  ;;  %v67_v14 = vld [vmem:[%s66_s23] sm:$0x1]  ;;  %s78_s28 = scalar_lea.vmem [#allocation6], %s681_s26  ;;  %s86_s0 = scalar_lea.vmem [#allocation6], %s683_s30 }
  0x3b   :  { %68 = vst [vmem:[#allocation2 + $0x1] sm:$0x1] %v67_v14  ;;  %v71_v15 = vld [vmem:[%s70_s24] sm:$0x1]  ;;  %s82_s29 = scalar_lea.vmem [#allocation6], %s682_s27  ;;  %s90_s5 = scalar_lea.vmem [#allocation6], %s684_s4 }
  0x3c   :  { %1065 = vmatpush3.bf16.msra.mxu0 %v1396_v10  ;;  %1089 = vmatpush3.bf16.msra.mxu1 %v1396_v10  ;;  %72 = vst [vmem:[#allocation2 + $0x8] sm:$0x1] %v71_v15  ;;  %v75_v17 = vld [vmem:[%s74_s25] sm:$0x1]  ;;  %s94_s8 = scalar_lea.vmem [#allocation6], %s685_s6  ;;  %s102_s12 = scalar_lea.vmem [#allocation6], %s687_s10 }
  0x3d   :  { %1066 = vmatprep.subr.bf16.mxu0 %v1314_v3  ;;  %1090 = vmatprep.subr.bf16.mxu1 %v1314_v3  ;;  %76 = vst [vmem:[#allocation2 + $0x9] sm:$0x1] %v75_v17  ;;  %v79_v32 = vld [vmem:[%s78_s28] sm:$0x1]  ;;  %s98_s9 = scalar_lea.vmem [#allocation6], %s686_s7  ;;  %s106_s13 = scalar_lea.vmem [#allocation6], %s688_s11 }
  0x3e   :  { %v83_v33 = vld [vmem:[%s82_s29] sm:$0x1]  ;;  %80 = vst [vmem:[#allocation2 + $0x10] sm:$0x1] %v79_v32  ;;  %s689_s14 = sld [smem:[#allocation3 + $0x6]]  ;;  %s691_s1 = sld [smem:[#allocation3 + $0x7]] }
  0x3f   :  { %84 = vst [vmem:[#allocation2 + $0x11] sm:$0x1] %v83_v33  ;;  %v87_v39 = vld [vmem:[%s86_s0] sm:$0x1]  ;;  %s690_s15 = sld [smem:[#allocation3 + $0x86]]  ;;  %s692_s18 = sld [smem:[#allocation3 + $0x87]] }
  0x40   :  { %1068 = vmatpush3.bf16.msra.mxu0 %v1402_v16  ;;  %1092 = vmatpush3.bf16.msra.mxu1 %v1402_v16  ;;  %v91_v40 = vld [vmem:[%s90_s5] sm:$0x1]  ;;  %88 = vst [vmem:[#allocation2 + $0x18] sm:$0x1] %v87_v39 }
  0x41   :  { %1069 = vmatprep.subr.bf16.mxu0 %v1314_v3  ;;  %1093 = vmatprep.subr.bf16.mxu1 %v1314_v3  ;;  %92 = vst [vmem:[#allocation2 + $0x19] sm:$0x1] %v91_v40  ;;  %v95_v46 = vld [vmem:[%s94_s8] sm:$0x1] }
  0x42   :  { %v141_v23 = vld [vmem:[#allocation2] sm:$0xff]  ;;  %v99_v47 = vld [vmem:[%s98_s9] sm:$0x1]  ;;  %96 = vst [vmem:[#allocation2 + $0x20] sm:$0x1] %v95_v46 }
  0x43   :  { %1233 = vtanh.f32 %v141_v23  ;;  %100 = vst [vmem:[#allocation2 + $0x21] sm:$0x1] %v99_v47  ;;  %v103_v53 = vld [vmem:[%s102_s12] sm:$0x1] }
  0x44   :  { %1071 = vmatpush3.bf16.msra.mxu0 %v1408_v20  ;;  %1095 = vmatpush3.bf16.msra.mxu1 %v1408_v20  ;;  %v143_v34 = vld [vmem:[#allocation2 + $0x8] sm:$0xff]  ;;  %v107_v54 = vld [vmem:[%s106_s13] sm:$0x1]  ;;  %104 = vst [vmem:[#allocation2 + $0x28] sm:$0x1] %v103_v53  ;;  %s110_s16 = scalar_lea.vmem [#allocation6], %s689_s14 }
  0x45   :  { %1072 = vmatprep.subr.bf16.mxu0 %v1314_v3  ;;  %1096 = vmatprep.subr.bf16.mxu1 %v1314_v3  ;;  %108 = vst [vmem:[#allocation2 + $0x29] sm:$0x1] %v107_v54  ;;  %v111_v60 = vld [vmem:[%s110_s16] sm:$0x1]  ;;  %s114_s17 = scalar_lea.vmem [#allocation6], %s690_s15  ;;  %s118_s2 = scalar_lea.vmem [#allocation6], %s691_s1 }
  0x46   :  { %v216_v41 = vld [vmem:[#allocation2 + $0x10] sm:$0xff]  ;;  %v115_v61 = vld [vmem:[%s114_s17] sm:$0x1]  ;;  %112 = vst [vmem:[#allocation2 + $0x30] sm:$0x1] %v111_v60  ;;  %s122_s19 = scalar_lea.vmem [#allocation6], %s692_s18 }
  0x47   :  { %116 = vst [vmem:[#allocation2 + $0x31] sm:$0x1] %v115_v61 }
  0x48   :  { %1074 = vmatpush3.bf16.msra.mxu0 %v1414_v24  ;;  %1098 = vmatpush3.bf16.msra.mxu1 %v1414_v24  ;;  %v289_v48 = vld [vmem:[#allocation2 + $0x18] sm:$0xff] }
  0x49   :  { %1075 = vmatprep.subr.bf16.mxu0 %v1314_v3  ;;  %1099 = vmatprep.subr.bf16.mxu1 %v1314_v3 }
  0x4a   :  { %v362_v55 = vld [vmem:[#allocation2 + $0x20] sm:$0xff] }
  0x4c   :  { %1077 = vmatpush3.bf16.msra.mxu0 %v1420_v27  ;;  %1101 = vmatpush3.bf16.msra.mxu1 %v1420_v27  ;;  %v435_v62 = vld [vmem:[#allocation2 + $0x28] sm:$0xff] }
  0x4d   :  { %1078 = vmatprep.subr.bf16.mxu0 %v1314_v3  ;;  %1102 = vmatprep.subr.bf16.mxu1 %v1314_v3  ;;  %v1234_v31 = vpop.eup %1233 }
  0x4e   :  { %v508_v5 = vld [vmem:[#allocation2 + $0x30] sm:$0xff] }
  0x50   :  { %1080 = vmatpush3.bf16.msra.mxu0 %v1426_v30  ;;  %1104 = vmatpush3.bf16.msra.mxu1 %v1426_v30 }
  0x51   :  { %1105 = vmatprep.subr.bf16.mxu0 %v1314_v3  ;;  %1129 = vmatprep.subr.bf16.mxu1 %v1314_v3 }
  0x53   :  { %845 = vmatmul.mubr.f32.vlgmr.msra.gmra.mrb[0].mxu0 %v1234_v31 }
  0x54   :  { %1107 = vmatpush3.bf16.msra.mxu0 %v1374_v4  ;;  %914 = vmatprep.mubr.msk.f32.mxu0 %vm1315_vm0, %v1316_v6 }
  0x55   :  { %1108 = vmatprep.subr.bf16.mxu0 %v1314_v3 }
  0x58   :  { %1110 = vmatpush3.bf16.msra.mxu0 %v1390_v7 }
  0x59   :  { %1111 = vmatprep.subr.bf16.mxu0 %v1314_v3 }
  0x5c   :  { %1113 = vmatpush3.bf16.msra.mxu0 %v1396_v10 }
  0x5d   :  { %1114 = vmatprep.subr.bf16.mxu0 %v1314_v3 }
  0x60   :  { %1116 = vmatpush3.bf16.msra.mxu0 %v1402_v16 }
  0x61   :  { %1117 = vmatprep.subr.bf16.mxu0 %v1314_v3 }
  0x64   :  { %1119 = vmatpush3.bf16.msra.mxu0 %v1408_v20 }
  0x65   :  { %1120 = vmatprep.subr.bf16.mxu0 %v1314_v3 }
  0x68   :  { %1122 = vmatpush3.bf16.msra.mxu0 %v1414_v24 }
  0x69   :  { %1123 = vmatprep.subr.bf16.mxu0 %v1314_v3 }
  0x6c   :  { %1125 = vmatpush3.bf16.msra.mxu0 %v1420_v27 }
  0x6d   :  { %1126 = vmatprep.subr.bf16.mxu0 %v1314_v3 }
  0x70   :  { %1128 = vmatpush3.bf16.msra.mxu0 %v1426_v30 }
  0x71   :  { %1153 = vmatprep.subr.bf16.mxu0 %v1314_v3 }
 0x126   :  { %v210_v35 = vpop.f32.mrb[0].mxu0 }
 0x127   :  { %v214_v36 = vadd.f32 %v210_v35, %v143_v34  ;;  %v846_v37 = vpop.f32.mrb[1].mxu0 }
 0x129   :  { %1235 = vtanh.f32 %v214_v36 }
 0x133   :  { %v1236_v38 = vpop.eup %1235 }
 0x134   :  { %880 = vmatmul.mubr.f32.vlgmr.msra.gmra.mrb[0].mxu1 %v1236_v38 }
 0x135   :  { %1131 = vmatpush3.bf16.msra.mxu1 %v1374_v4  ;;  %949 = vmatprep.mubr.msk.f32.mxu1 %vm1315_vm0, %v1316_v6 }
 0x136   :  { %1132 = vmatprep.subr.bf16.mxu1 %v1314_v3 }
 0x139   :  { %1134 = vmatpush3.bf16.msra.mxu1 %v1390_v7 }
 0x13a   :  { %1135 = vmatprep.subr.bf16.mxu1 %v1314_v3 }
 0x13d   :  { %1137 = vmatpush3.bf16.msra.mxu1 %v1396_v10 }
 0x13e   :  { %1138 = vmatprep.subr.bf16.mxu1 %v1314_v3 }
 0x141   :  { %1140 = vmatpush3.bf16.msra.mxu1 %v1402_v16 }
 0x142   :  { %1141 = vmatprep.subr.bf16.mxu1 %v1314_v3 }
 0x145   :  { %1143 = vmatpush3.bf16.msra.mxu1 %v1408_v20 }
 0x146   :  { %1144 = vmatprep.subr.bf16.mxu1 %v1314_v3 }
 0x149   :  { %1146 = vmatpush3.bf16.msra.mxu1 %v1414_v24 }
 0x14a   :  { %1147 = vmatprep.subr.bf16.mxu1 %v1314_v3 }
 0x14d   :  { %1149 = vmatpush3.bf16.msra.mxu1 %v1420_v27 }
 0x14e   :  { %1150 = vmatprep.subr.bf16.mxu1 %v1314_v3 }
 0x151   :  { %1152 = vmatpush3.bf16.msra.mxu1 %v1426_v30 }
 0x152   :  { %1177 = vmatprep.subr.bf16.mxu1 %v1314_v3 }
 0x207   :  { %v283_v42 = vpop.f32.mrb[0].mxu1 }
 0x208   :  { %v287_v43 = vadd.f32 %v283_v42, %v216_v41  ;;  %v881_v44 = vpop.f32.mrb[1].mxu1 }
 0x20a   :  { %1237 = vtanh.f32 %v287_v43 }
 0x214   :  { %v1238_v45 = vpop.eup %1237 }
 0x215   :  { %915 = vmatmul.mubr.f32.vlgmr.msra.gmra.mrb[2].mxu0 %v1238_v45 }
 0x216   :  { %1155 = vmatpush3.bf16.msra.mxu0 %v1374_v4  ;;  %984 = vmatprep.mubr.msk.f32.mxu0 %vm1315_vm0, %v1316_v6 }
 0x217   :  { %1156 = vmatprep.subr.bf16.mxu0 %v1314_v3 }
 0x21a   :  { %1158 = vmatpush3.bf16.msra.mxu0 %v1390_v7 }
 0x21b   :  { %1159 = vmatprep.subr.bf16.mxu0 %v1314_v3 }
 0x21e   :  { %1161 = vmatpush3.bf16.msra.mxu0 %v1396_v10 }
 0x21f   :  { %1162 = vmatprep.subr.bf16.mxu0 %v1314_v3 }
 0x222   :  { %1164 = vmatpush3.bf16.msra.mxu0 %v1402_v16 }
 0x223   :  { %1165 = vmatprep.subr.bf16.mxu0 %v1314_v3 }
 0x226   :  { %1167 = vmatpush3.bf16.msra.mxu0 %v1408_v20 }
 0x227   :  { %1168 = vmatprep.subr.bf16.mxu0 %v1314_v3 }
 0x22a   :  { %1170 = vmatpush3.bf16.msra.mxu0 %v1414_v24 }
 0x22b   :  { %1171 = vmatprep.subr.bf16.mxu0 %v1314_v3 }
 0x22e   :  { %1173 = vmatpush3.bf16.msra.mxu0 %v1420_v27 }
 0x22f   :  { %1174 = vmatprep.subr.bf16.mxu0 %v1314_v3 }
 0x232   :  { %1176 = vmatpush3.bf16.msra.mxu0 %v1426_v30 }
 0x233   :  { %1201 = vmatprep.subr.bf16.mxu0 %v1314_v3 }
 0x2e8   :  { %v356_v49 = vpop.f32.mrb[2].mxu0 }
 0x2e9   :  { %v360_v50 = vadd.f32 %v356_v49, %v289_v48  ;;  %v916_v51 = vpop.f32.mrb[3].mxu0 }
 0x2eb   :  { %1239 = vtanh.f32 %v360_v50 }
 0x2f5   :  { %v1240_v52 = vpop.eup %1239 }
 0x2f6   :  { %950 = vmatmul.mubr.f32.vlgmr.msra.gmra.mrb[2].mxu1 %v1240_v52 }
 0x2f7   :  { %1179 = vmatpush3.bf16.msra.mxu1 %v1374_v4  ;;  %1019 = vmatprep.mubr.msk.f32.mxu1 %vm1315_vm0, %v1316_v6 }
 0x2f8   :  { %1180 = vmatprep.subr.bf16.mxu1 %v1314_v3 }
 0x2fb   :  { %1182 = vmatpush3.bf16.msra.mxu1 %v1390_v7 }
 0x2fc   :  { %1183 = vmatprep.subr.bf16.mxu1 %v1314_v3 }
 0x2ff   :  { %1185 = vmatpush3.bf16.msra.mxu1 %v1396_v10 }
 0x300   :  { %1186 = vmatprep.subr.bf16.mxu1 %v1314_v3 }
 0x303   :  { %1188 = vmatpush3.bf16.msra.mxu1 %v1402_v16 }
 0x304   :  { %1189 = vmatprep.subr.bf16.mxu1 %v1314_v3 }
 0x307   :  { %1191 = vmatpush3.bf16.msra.mxu1 %v1408_v20 }
 0x308   :  { %1192 = vmatprep.subr.bf16.mxu1 %v1314_v3 }
 0x30b   :  { %1194 = vmatpush3.bf16.msra.mxu1 %v1414_v24 }
 0x30c   :  { %1195 = vmatprep.subr.bf16.mxu1 %v1314_v3 }
 0x30f   :  { %1197 = vmatpush3.bf16.msra.mxu1 %v1420_v27 }
 0x310   :  { %1198 = vmatprep.subr.bf16.mxu1 %v1314_v3 }
 0x313   :  { %1200 = vmatpush3.bf16.msra.mxu1 %v1426_v30 }
 0x3c9   :  { %v429_v56 = vpop.f32.mrb[2].mxu1 }
 0x3ca   :  { %v433_v57 = vadd.f32 %v429_v56, %v362_v55  ;;  %v951_v58 = vpop.f32.mrb[3].mxu1 }
 0x3cc   :  { %1241 = vtanh.f32 %v433_v57 }
 0x3d6   :  { %v1242_v59 = vpop.eup %1241 }
 0x3d7   :  { %985 = vmatmul.mubr.f32.vlgmr.msra.gmra.mrb[4].mxu0 %v1242_v59 }
 0x3d8   :  { %1203 = vmatpush3.bf16.msra.mxu0 %v1374_v4  ;;  %1054 = vmatprep.mubr.msk.f32.mxu0 %vm1315_vm0, %v1316_v6  ;;  %v123_v4 = vld [vmem:[%s122_s19] sm:$0x1] }
 0x3d9   :  { %1204 = vmatprep.subr.bf16.mxu0 %v1314_v3  ;;  %124 = vst [vmem:[#allocation2 + $0x39] sm:$0x1] %v123_v4 }
 0x3dc   :  { %1206 = vmatpush3.bf16.msra.mxu0 %v1390_v7 }
 0x3dd   :  { %1207 = vmatprep.subr.bf16.mxu0 %v1314_v3 }
 0x3e0   :  { %1209 = vmatpush3.bf16.msra.mxu0 %v1396_v10 }
 0x3e1   :  { %1210 = vmatprep.subr.bf16.mxu0 %v1314_v3 }
 0x3e4   :  { %1212 = vmatpush3.bf16.msra.mxu0 %v1402_v16 }
 0x3e5   :  { %1213 = vmatprep.subr.bf16.mxu0 %v1314_v3 }
 0x3e8   :  { %1215 = vmatpush3.bf16.msra.mxu0 %v1408_v20 }
 0x3e9   :  { %1216 = vmatprep.subr.bf16.mxu0 %v1314_v3 }
 0x3ec   :  { %1218 = vmatpush3.bf16.msra.mxu0 %v1414_v24 }
 0x3ed   :  { %1219 = vmatprep.subr.bf16.mxu0 %v1314_v3 }
 0x3f0   :  { %1221 = vmatpush3.bf16.msra.mxu0 %v1420_v27 }
 0x3f1   :  { %1222 = vmatprep.subr.bf16.mxu0 %v1314_v3  ;;  %v119_v3 = vld [vmem:[%s118_s2] sm:$0x1] }
 0x3f2   :  { %120 = vst [vmem:[#allocation2 + $0x38] sm:$0x1] %v119_v3 }
 0x3f4   :  { %1224 = vmatpush3.bf16.msra.mxu0 %v1426_v30 }
 0x3f9   :  { %v581_v10 = vld [vmem:[#allocation2 + $0x38] sm:$0xff] }
 0x4aa   :  { %v502_v63 = vpop.f32.mrb[4].mxu0 }
 0x4ab   :  { %v506_v0 = vadd.f32 %v502_v63, %v435_v62  ;;  %v986_v1 = vpop.f32.mrb[5].mxu0 }
 0x4ad   :  { %1243 = vtanh.f32 %v506_v0 }
 0x4b7   :  { %v1244_v2 = vpop.eup %1243 }
 0x4b8   :  { %1020 = vmatmul.mubr.f32.vlgmr.msra.gmra.mrb[4].mxu1 %v1244_v2 }
 0x58b   :  { %v575_v6 = vpop.f32.mrb[4].mxu1 }
 0x58c   :  { %v579_v7 = vadd.f32 %v575_v6, %v508_v5  ;;  %v1021_v8 = vpop.f32.mrb[5].mxu1 }
 0x58e   :  { %1245 = vtanh.f32 %v579_v7 }
 0x598   :  { %v1246_v9 = vpop.eup %1245 }
 0x599   :  { %1055 = vmatmul.mubr.f32.vlgmr.msra.gmra.mrb[6].mxu0 %v1246_v9 }
 0x66c   :  { %v648_v11 = vpop.f32.mrb[6].mxu0 }
 0x66d   :  { %v652_v12 = vadd.f32 %v648_v11, %v581_v10  ;;  %v1056_v13 = vpop.f32.mrb[7].mxu0 }
 0x66f   :  { %1247 = vtanh.f32 %v652_v12 }
 0x679   :  { %v1248_v14 = vpop.eup %1247 }
 0x67a   :  { %654 = vst [vmem:[%s1529_s3] sm:$0xff] %v1248_v14 }
 0x67b   :  { %659 = vsyncpa [#allocation4], 1 }
 0x67c   :  { %660 = vsyncpa [#allocation8], 1 }
 0x67d   :  { %661 = vsyncpa [#allocation5], 1 }

</bundles_post_ra>
